<compile_context>
chip_gen: v5e
topology: v5e:2x2
jax: 0.10.0
libtpu: 0.0.40
codegen_flags: <defaults>
</compile_context>

<pallas_src>
import functools

import jax
import jax.numpy as jnp
from jax.experimental import pallas as pl
from jax.experimental.pallas import tpu as pltpu

R_SUN_MM = 695.7  # astropy: 1 solRad = 6.957e8 m = 695.7 Mm


def _cdiv(a, b):
    return (a + b - 1) // b


def _round_up(x, m):
    return ((x + m - 1) // m) * m


def _default_tile_lanes():
    """Per-generation tile (in lanes of 8 points each)."""
    try:
        kind = jax.devices()[0].device_kind.lower()
    except Exception:
        kind = ""
    if "v7" in kind or "v6" in kind:
        # ~3 MiB per input block; 2 inputs x 2 buffers + 2 MiB acc ~= 14 MiB,
        # well under the 32 MiB scoped-VMEM default of v6e/v7x.
        return 32768
    # v5e / unknown: ~7 MiB total footprint, under the 16 MiB scoped default.
    return 16384


def _energy_loss_kernel(b_ref, c_ref, out_ref, acc_ref, *, base_radius):
    """Accumulate sum(|b|^2) and sum(clip(|r|-r0,0)^2) over lane tiles.

    b_ref   : (24, T) block of flattened b values (any order; zero padded)
    c_ref   : (24, T) block, rows 0..7 = x, 8..15 = y, 16..23 = z (comp-major)
    out_ref : (1, 2, 8, 128) per-split partial-sum planes
    acc_ref : (2, 8, T) f32 elementwise accumulator (persists across steps)
    """
    i = pl.program_id(1)

    @pl.when(i == 0)
    def _init():
        acc_ref[...] = jnp.zeros_like(acc_ref)

    # --- |b|^2: sum of squares of every element (no per-point grouping needed)
    b0 = b_ref[0:8, :].astype(jnp.float32)
    b1 = b_ref[8:16, :].astype(jnp.float32)
    b2 = b_ref[16:24, :].astype(jnp.float32)
    acc_ref[0] = acc_ref[0] + (b0 * b0 + b1 * b1 + b2 * b2)

    # --- per-point radius weight: sublane-aligned VPU adds + one EUP sqrt
    cx = c_ref[0:8, :].astype(jnp.float32)
    cy = c_ref[8:16, :].astype(jnp.float32)
    cz = c_ref[16:24, :].astype(jnp.float32)
    r2 = cx * cx + cy * cy + cz * cz
    rw = jnp.maximum(jnp.sqrt(r2) - base_radius, 0.0)
    acc_ref[1] = acc_ref[1] + rw * rw

    @pl.when(i == pl.num_programs(1) - 1)
    def _finalize():
        out_ref[0, 0] = jnp.full((8, 128), jnp.sum(acc_ref[0]), jnp.float32)
        out_ref[0, 1] = jnp.full((8, 128), jnp.sum(acc_ref[1]), jnp.float32)


def energy_loss_pallas(b, coords, *, base_radius=1.0, Mm_per_ds=R_SUN_MM,
                       tile_lanes=None, num_splits=2, slab_dtype=jnp.float32):
    """b, coords: (N, 3) float arrays (PyTorch-style last-dim-vector layout)."""
    assert b.shape == coords.shape and b.shape[-1] == 3
    assert num_splits >= 1
    n = b.shape[0]

    base_radius_ds = (base_radius * R_SUN_MM) / Mm_per_ds
    if base_radius_ds < 0:
        # Zero-padded tail points rely on clip(|r| - r0, 0) == 0 at r = 0.
        raise ValueError("base_radius in ds units must be >= 0")

    if tile_lanes is None:
        tile_lanes = _default_tile_lanes()
    assert tile_lanes % 128 == 0

    # ---- tiling: bounded padding, steps divisible by num_splits -------------
    n_lanes_raw = _cdiv(n, 8)                          # ceil(N / 8) lanes
    steps_per_split = max(1, _cdiv(n_lanes_raw, num_splits * tile_lanes))
    num_steps = num_splits * steps_per_split
    tile = _round_up(_cdiv(n_lanes_raw, num_steps), 128)   # <=~128 pad lanes/step
    n_lanes = num_steps * tile
    n_pad_pts = 8 * n_lanes

    # ---- build lane-dense slabs ---------------------------------------------
    # b: plain flatten + pad + reshape (no transpose needed).
    b_flat = jnp.asarray(b, slab_dtype).reshape(-1)                  # (3N,)
    b_flat = jnp.pad(b_flat, (0, 24 * n_lanes - b_flat.shape[0]))
    b_slab = b_flat.reshape(24, n_lanes)

    # coords: component-major relayout (the only remaining transpose).
    ct = jnp.asarray(coords, slab_dtype).T                           # (3, N)
    ct = jnp.pad(ct, ((0, 0), (0, n_pad_pts - n)))
    c_slab = ct.reshape(24, n_lanes)    # rows 0-7 = x, 8-15 = y, 16-23 = z

    kernel = functools.partial(_energy_loss_kernel,
                               base_radius=float(base_radius_ds))

    itemsize = jnp.dtype(slab_dtype).itemsize
    cost = pl.CostEstimate(
        flops=int(11 * n_pad_pts),
        transcendentals=int(n_pad_pts),
        bytes_accessed=int(2 * 24 * n_lanes * itemsize
                           + num_splits * 2 * 8 * 128 * 4),
    )

    spc = steps_per_split
    sums = pl.pallas_call(
        kernel,
        out_shape=jax.ShapeDtypeStruct((num_splits, 2, 8, 128), jnp.float32),
        grid_spec=pltpu.PrefetchScalarGridSpec(
            num_scalar_prefetch=0,
            grid=(num_splits, spc),
            in_specs=[
                pl.BlockSpec((24, tile), lambda c, i: (0, c * spc + i)),
                pl.BlockSpec((24, tile), lambda c, i: (0, c * spc + i)),
            ],
            out_specs=pl.BlockSpec((1, 2, 8, 128), lambda c, i: (c, 0, 0, 0)),
            scratch_shapes=[pltpu.VMEM((2, 8, tile), jnp.float32)],
        ),
        compiler_params=pltpu.CompilerParams(
            # split axis across TensorCores on multi-TC chips; lane-tile axis
            # is the sequential reduction.
            dimension_semantics=("parallel", "arbitrary")),
        cost_estimate=cost,
    )(b_slab, c_slab)

    inv_n = 1.0 / float(n)
    mean_b2 = jnp.sum(sums[:, 0, 0, 0]) * inv_n       # mean(|b|^2)
    mean_rw2 = jnp.sum(sums[:, 1, 0, 0]) * inv_n      # mean(clip(|r|-r0,0)^2)
    return mean_b2 * mean_rw2


def energy_loss_ref(b, coords, *, base_radius=1.0, Mm_per_ds=R_SUN_MM):
    base_radius_ds = (base_radius * R_SUN_MM) / Mm_per_ds
    b = jnp.asarray(b, jnp.float32)
    coords = jnp.asarray(coords, jnp.float32)
    energy_loss = jnp.mean(jnp.sum(b ** 2, axis=-1))
    radius = jnp.sqrt(jnp.sum(coords ** 2, axis=-1))
    rw = jnp.maximum(radius - base_radius_ds, 0.0)
    return jnp.mean(energy_loss * rw ** 2)


if __name__ == "__main__":
    key = jax.random.PRNGKey(0)
    kb, kc = jax.random.split(key)

    # deliberately not a multiple of 8 to exercise the zero-padding path
    N = 8195
    b = jax.random.normal(kb, (N, 3), dtype=jnp.float32)
    # radii spread around the clip threshold (base_radius_ds = 1.0)
    coords = jax.random.uniform(kc, (N, 3), dtype=jnp.float32,
                                minval=-1.5, maxval=1.5)

    ref = energy_loss_ref(b, coords, base_radius=1.0, Mm_per_ds=R_SUN_MM)

    # small tile -> multi-step per-split grid accumulation path
    out = energy_loss_pallas(b, coords, base_radius=1.0, Mm_per_ds=R_SUN_MM,
                             tile_lanes=256)
    out = jax.block_until_ready(out)
    assert jnp.allclose(out, ref, rtol=1e-4, atol=1e-6), (out, ref)

    # default per-generation large-tile path (one step per split at this N)
    out2 = energy_loss_pallas(b, coords, base_radius=1.0, Mm_per_ds=R_SUN_MM)
    out2 = jax.block_until_ready(out2)
    assert jnp.allclose(out2, ref, rtol=1e-4, atol=1e-6), (out2, ref)

    # single-split path (no TC split) should also match
    out3 = energy_loss_pallas(b, coords, base_radius=1.0, Mm_per_ds=R_SUN_MM,
                              num_splits=1, tile_lanes=512)
    out3 = jax.block_until_ready(out3)
    assert jnp.allclose(out3, ref, rtol=1e-4, atol=1e-6), (out3, ref)

    print("KERNEL_OK")
</pallas_src>

<mosaic_0001>
module attributes {stable_mosaic.version = 11 : i64} {
  func.func @_energy_loss_kernel(%arg0: i32, %arg1: i32, %arg2: memref<24x256xf32, #tpu.memory_space<vmem>>, %arg3: memref<24x256xf32, #tpu.memory_space<vmem>>, %arg4: memref<1x2x8x128xf32, #tpu.memory_space<vmem>>, %arg5: memref<2x8x256xf32, #tpu.memory_space<vmem>>) attributes {dimension_semantics = [#tpu.dimension_semantics<parallel>, #tpu.dimension_semantics<arbitrary>], iteration_bounds = array<i64: 2, 3>, scalar_prefetch = 0 : i64, scratch_operands = 1 : i64, tpu.core_type = #tpu.core_type<tc>, window_params = [{transform_indices = @transform_0, window_bounds = array<i64: 24, 256>}, {transform_indices = @transform_1, window_bounds = array<i64: 24, 256>}, {transform_indices = @transform_2, window_bounds = array<i64: 1, 2, 8, 128>}]} {
    %c0_i32 = arith.constant 0 : i32
    %0 = arith.cmpi eq, %arg1, %c0_i32 : i32
    %1 = arith.extui %0 : i1 to i32
    %c0_i32_0 = arith.constant 0 : i32
    %2 = arith.cmpi ne, %1, %c0_i32_0 : i32
    scf.if %2 {
      %cst_23 = arith.constant 0.000000e+00 : f32
      %40 = vector.broadcast %cst_23 : f32 to vector<2x8x256xf32>
      %c0_24 = arith.constant 0 : index
      %c0_25 = arith.constant 0 : index
      %c0_26 = arith.constant 0 : index
      %41 = vector.load %arg5[%c0_24, %c0_25, %c0_26] : memref<2x8x256xf32, #tpu.memory_space<vmem>>, vector<2x8x256xf32>
      tpu.vector_store %arg5[%c0_24, %c0_25, %c0_26], %40 {strides = array<i32>} : memref<2x8x256xf32, #tpu.memory_space<vmem>>, vector<2x8x256xf32>,
    } else {
    }
    %c0 = arith.constant 0 : index
    %c0_1 = arith.constant 0 : index
    %3 = vector.load %arg2[%c0, %c0_1] : memref<24x256xf32, #tpu.memory_space<vmem>>, vector<8x256xf32>
    %c8 = arith.constant 8 : index
    %c0_2 = arith.constant 0 : index
    %4 = vector.load %arg2[%c8, %c0_2] : memref<24x256xf32, #tpu.memory_space<vmem>>, vector<8x256xf32>
    %c16 = arith.constant 16 : index
    %c0_3 = arith.constant 0 : index
    %5 = vector.load %arg2[%c16, %c0_3] : memref<24x256xf32, #tpu.memory_space<vmem>>, vector<8x256xf32>
    %c0_4 = arith.constant 0 : index
    %c0_5 = arith.constant 0 : index
    %c0_6 = arith.constant 0 : index
    %6 = vector.load %arg5[%c0_4, %c0_5, %c0_6] : memref<2x8x256xf32, #tpu.memory_space<vmem>>, vector<1x8x256xf32>
    %7 = vector.shape_cast %6 : vector<1x8x256xf32> to vector<8x256xf32>
    %8 = arith.mulf %3, %3 : vector<8x256xf32>
    %9 = arith.mulf %4, %4 : vector<8x256xf32>
    %10 = arith.addf %8, %9 : vector<8x256xf32>
    %11 = arith.mulf %5, %5 : vector<8x256xf32>
    %12 = arith.addf %10, %11 : vector<8x256xf32>
    %13 = arith.addf %7, %12 : vector<8x256xf32>
    %c0_7 = arith.constant 0 : index
    %c0_8 = arith.constant 0 : index
    %c0_9 = arith.constant 0 : index
    %14 = vector.load %arg5[%c0_7, %c0_8, %c0_9] : memref<2x8x256xf32, #tpu.memory_space<vmem>>, vector<1x8x256xf32>
    %15 = vector.shape_cast %14 : vector<1x8x256xf32> to vector<8x256xf32>
    %16 = vector.shape_cast %13 : vector<8x256xf32> to vector<1x8x256xf32>
    tpu.vector_store %arg5[%c0_7, %c0_8, %c0_9], %16 {strides = array<i32>} : memref<2x8x256xf32, #tpu.memory_space<vmem>>, vector<1x8x256xf32>,
    %c0_10 = arith.constant 0 : index
    %c0_11 = arith.constant 0 : index
    %17 = vector.load %arg3[%c0_10, %c0_11] : memref<24x256xf32, #tpu.memory_space<vmem>>, vector<8x256xf32>
    %c8_12 = arith.constant 8 : index
    %c0_13 = arith.constant 0 : index
    %18 = vector.load %arg3[%c8_12, %c0_13] : memref<24x256xf32, #tpu.memory_space<vmem>>, vector<8x256xf32>
    %c16_14 = arith.constant 16 : index
    %c0_15 = arith.constant 0 : index
    %19 = vector.load %arg3[%c16_14, %c0_15] : memref<24x256xf32, #tpu.memory_space<vmem>>, vector<8x256xf32>
    %20 = arith.mulf %17, %17 : vector<8x256xf32>
    %21 = arith.mulf %18, %18 : vector<8x256xf32>
    %22 = arith.addf %20, %21 : vector<8x256xf32>
    %23 = arith.mulf %19, %19 : vector<8x256xf32>
    %24 = arith.addf %22, %23 : vector<8x256xf32>
    %25 = math.sqrt %24 : vector<8x256xf32>
    %cst = arith.constant 1.000000e+00 : f32
    %26 = vector.broadcast %cst : f32 to vector<8x256xf32>
    %27 = arith.subf %25, %26 : vector<8x256xf32>
    %cst_16 = arith.constant 0.000000e+00 : f32
    %28 = vector.broadcast %cst_16 : f32 to vector<8x256xf32>
    %29 = arith.maximumf %27, %28 : vector<8x256xf32>
    %c1 = arith.constant 1 : index
    %c0_17 = arith.constant 0 : index
    %c0_18 = arith.constant 0 : index
    %30 = vector.load %arg5[%c1, %c0_17, %c0_18] : memref<2x8x256xf32, #tpu.memory_space<vmem>>, vector<1x8x256xf32>
    %31 = vector.shape_cast %30 : vector<1x8x256xf32> to vector<8x256xf32>
    %32 = arith.mulf %29, %29 : vector<8x256xf32>
    %33 = arith.addf %31, %32 : vector<8x256xf32>
    %c1_19 = arith.constant 1 : index
    %c0_20 = arith.constant 0 : index
    %c0_21 = arith.constant 0 : index
    %34 = vector.load %arg5[%c1_19, %c0_20, %c0_21] : memref<2x8x256xf32, #tpu.memory_space<vmem>>, vector<1x8x256xf32>
    %35 = vector.shape_cast %34 : vector<1x8x256xf32> to vector<8x256xf32>
    %36 = vector.shape_cast %33 : vector<8x256xf32> to vector<1x8x256xf32>
    tpu.vector_store %arg5[%c1_19, %c0_20, %c0_21], %36 {strides = array<i32>} : memref<2x8x256xf32, #tpu.memory_space<vmem>>, vector<1x8x256xf32>,
    %c2_i32 = arith.constant 2 : i32
    %37 = arith.cmpi eq, %arg1, %c2_i32 : i32
    %38 = arith.extui %37 : i1 to i32
    %c0_i32_22 = arith.constant 0 : i32
    %39 = arith.cmpi ne, %38, %c0_i32_22 : i32
    scf.if %39 {
      %c0_23 = arith.constant 0 : index
      %c0_24 = arith.constant 0 : index
      %c0_25 = arith.constant 0 : index
      %40 = vector.load %arg5[%c0_23, %c0_24, %c0_25] : memref<2x8x256xf32, #tpu.memory_space<vmem>>, vector<1x8x256xf32>
      %41 = vector.shape_cast %40 : vector<1x8x256xf32> to vector<8x256xf32>
      %42 = vector.shape_cast %41 : vector<8x256xf32> to vector<1x8x256xf32>
      %cst_26 = arith.constant dense<0.000000e+00> : vector<1xf32>
      %43 = vector.multi_reduction <add>, %42, %cst_26 [1, 2] : vector<1x8x256xf32> to vector<1xf32>
      %44 = vector.shape_cast %43 : vector<1xf32> to vector<1x1x1xf32>
      %45 = vector.extract %44[0, 0, 0] : f32 from vector<1x1x1xf32>
      %46 = vector.broadcast %45 : f32 to vector<8x128xf32>
      %c0_27 = arith.constant 0 : index
      %c0_28 = arith.constant 0 : index
      %c0_29 = arith.constant 0 : index
      %c0_30 = arith.constant 0 : index
      %47 = vector.load %arg4[%c0_27, %c0_28, %c0_29, %c0_30] : memref<1x2x8x128xf32, #tpu.memory_space<vmem>>, vector<1x1x8x128xf32>
      %48 = vector.shape_cast %47 : vector<1x1x8x128xf32> to vector<8x128xf32>
      %49 = vector.shape_cast %46 : vector<8x128xf32> to vector<1x1x8x128xf32>
      tpu.vector_store %arg4[%c0_27, %c0_28, %c0_29, %c0_30], %49 {strides = array<i32>} : memref<1x2x8x128xf32, #tpu.memory_space<vmem>>, vector<1x1x8x128xf32>,
      %c1_31 = arith.constant 1 : index
      %c0_32 = arith.constant 0 : index
      %c0_33 = arith.constant 0 : index
      %50 = vector.load %arg5[%c1_31, %c0_32, %c0_33] : memref<2x8x256xf32, #tpu.memory_space<vmem>>, vector<1x8x256xf32>
      %51 = vector.shape_cast %50 : vector<1x8x256xf32> to vector<8x256xf32>
      %52 = vector.shape_cast %51 : vector<8x256xf32> to vector<1x8x256xf32>
      %cst_34 = arith.constant dense<0.000000e+00> : vector<1xf32>
      %53 = vector.multi_reduction <add>, %52, %cst_34 [1, 2] : vector<1x8x256xf32> to vector<1xf32>
      %54 = vector.shape_cast %53 : vector<1xf32> to vector<1x1x1xf32>
      %55 = vector.extract %54[0, 0, 0] : f32 from vector<1x1x1xf32>
      %56 = vector.broadcast %55 : f32 to vector<8x128xf32>
      %c0_35 = arith.constant 0 : index
      %c1_36 = arith.constant 1 : index
      %c0_37 = arith.constant 0 : index
      %c0_38 = arith.constant 0 : index
      %57 = vector.load %arg4[%c0_35, %c1_36, %c0_37, %c0_38] : memref<1x2x8x128xf32, #tpu.memory_space<vmem>>, vector<1x1x8x128xf32>
      %58 = vector.shape_cast %57 : vector<1x1x8x128xf32> to vector<8x128xf32>
      %59 = vector.shape_cast %56 : vector<8x128xf32> to vector<1x1x8x128xf32>
      tpu.vector_store %arg4[%c0_35, %c1_36, %c0_37, %c0_38], %59 {strides = array<i32>} : memref<1x2x8x128xf32, #tpu.memory_space<vmem>>, vector<1x1x8x128xf32>,
    } else {
    }
    return
  }
  func.func @transform_0(%arg0: i32, %arg1: i32) -> (i32, i32) {
    %c3_i32 = arith.constant 3 : i32
    %0 = arith.muli %arg0, %c3_i32 : i32
    %1 = arith.addi %0, %arg1 : i32
    %c0_i32 = arith.constant 0 : i32
    %c0_i32_0 = arith.constant 0 : i32
    return %c0_i32, %1 : i32, i32
  }
  func.func @transform_1(%arg0: i32, %arg1: i32) -> (i32, i32) {
    %c3_i32 = arith.constant 3 : i32
    %0 = arith.muli %arg0, %c3_i32 : i32
    %1 = arith.addi %0, %arg1 : i32
    %c0_i32 = arith.constant 0 : i32
    %c0_i32_0 = arith.constant 0 : i32
    return %c0_i32, %1 : i32, i32
  }
  func.func @transform_2(%arg0: i32, %arg1: i32) -> (i32, i32, i32, i32) {
    %c0_i32 = arith.constant 0 : i32
    %c0_i32_0 = arith.constant 0 : i32
    %c0_i32_1 = arith.constant 0 : i32
    %c0_i32_2 = arith.constant 0 : i32
    return %arg0, %c0_i32, %c0_i32_0, %c0_i32_1 : i32, i32, i32, i32
  }
}

</mosaic_0001>

<bundles_post_ra>
// kernel: tpu_custom_call.1
= control target key start
LH: loop header
LB: loop body
LE: loop exit
PB: predicated region body
PF: predicated region fallthrough
CT: control target
= control target key end

     0   :  { %s1046_s0 = inlined_call_operand.hbm [shape: f32[24,1536], index: 0, kind: input, shape index: {}]   ;;  %s1047_s1 = inlined_call_operand.hbm [shape: f32[24,1536], index: 1, kind: input, shape index: {}]   ;;  %s1048_s2 = inlined_call_operand.hbm [shape: f32[2,2,8,128], index: 2, kind: output, shape index: {}]  }
   0x1   :  { %1054 = sst [smem:[#allocation19_spill]] %s1046_s0 }
   0x2   :  { %7 = vsyncpa [#allocation4], 0 }
   0x3   :  { %9 = vsyncpa [#allocation4 + $0x1], 0 }
   0x4   :  { %10 = vsyncpa [#allocation7], 0 }
   0x5   :  { %12 = vsyncpa [#allocation7 + $0x1], 0 }
   0x6   :  { %13 = vsyncpa [#allocation5], 0 }
   0x7   :  { %15 = vsyncpa [#allocation5 + $0x1], 0  ;;  %s835_s9 = smov 0   ;;  %s837_s10 = smov 0  }
   0x8   :  { %s839_s11 = smov 0   ;;  %s841_s12 = smov 0  }
   0x9   :  { %s843_s13 = smov 0   ;;  %s845_s14 = smov 0  }
   0xa   :  { %s847_s15 = smov 0   ;;  %s849_s16 = smov 0  }
   0xb   :  { %s851_s17 = smov 0   ;;  %s853_s18 = smov 0  }
   0xc   :  { %s855_s19 = smov 0  }
   0xd LB: > { %1055 = sst [smem:[#allocation12_spill]] %s792_s14  ;;  %s479_s20 = sadd.s32 4294967295, %s812_s19   ;;  %s812_s19 = sphi %s855_s19, %s21_s19   ;;  %s808_s18 = sphi %s853_s18, %s1081_s18   ;;  %s804_s17 = sphi %s851_s17, %s1080_s17   ;;  %s800_s16 = sphi %s849_s16, %s1072_s16   ;;  %s796_s15 = sphi %s847_s15, %s1071_s15   ;;  %s792_s14 = sphi %s845_s14, %s1070_s14   ;;  %s788_s13 = sphi %s843_s13, %s1079_s13   ;;  %s784_s12 = sphi %s841_s12, %s1078_s12   ;;  %s780_s11 = sphi %s839_s11, %s1077_s11   ;;  %s776_s10 = sphi %s837_s10, %s1076_s10   ;;  %s772_s9 = sphi %s835_s9, %s1075_s9  }
   0xe   : > { %1056 = sst [smem:[#allocation13_spill]] %s804_s17  ;;  %s480_s21 = sadd.s32 4294967294, %s812_s19  }
   0xf   : > { %1057 = sst [smem:[#allocation14_spill]] %s808_s18  ;;  %s30_s22 = sadd.s32 1, %s804_s17 }
  0x10   : > { %s33_s23 = sadd.s32 1, %s808_s18  ;;  %p31_p0 = scmp.ge.s32.totalorder %s30_s22, 3 }
  0x11   : > { %s37_s24 = smul.u32 3, %s808_s18  ;;  %s44_s25 = sadd.s32 1, %s792_s14 }
  0x12   : > { %p51_p1 = scmp.ne.s32.totalorder %s792_s14, %s788_s13  ;;  %s1083_s22 = smov (%p31_p0, %s30_s22), 0 }
  0x13   : > { %1058 = sst [smem:[#allocation15_spill]] %s1083_s22  ;;  %s1085_s23 = smov (!%p31_p0, %s33_s23), %s808_s18 }
  0x14   : > { %s900_s26 = sadd.s32 %s804_s17, %s37_s24  ;;  %p52_p2 = scmp.eq.s32.totalorder %s812_s19, 0 }
  0x15   : > { %p35_p3 = scmp.ge.s32.totalorder %s1085_s23, 2  ;;  %p57_p4 = scmp.ne.s32.totalorder %s788_s13, %s784_s12 }
  0x16   : > { %p904_p5 = por %p52_p2, %p51_p1  ;;  %p58_p6 = scmp.eq.s32.totalorder %s479_s20, 0 }
  0x17   : > { %s1087_s23 = smov (%p35_p3, %s1085_s23), 0  ;;  %s100_s29 = sadd.s32 1, %s780_s11 }
  0x18   : > { %1060 = sst [smem:[#allocation16_spill]] %s1087_s23  ;;  %p910_p7 = por %p58_p6, %p57_p4 }
  0x19   : > { %s39_s30 = smul.u32 3, %s1087_s23  ;;  %s97_s3 = ssub.s32 %s808_s18, %s1087_s23 }
  0x1a   : > { %p98_p8 = scmp.eq.s32.totalorder %s97_s3, 0  ;;  %p110_p9 = scmp.ne.s32.totalorder %s780_s11, %s776_s10 }
  0x1b   : > { %s40_s4 = sadd.s32 %s39_s30, %s1083_s22  ;;  %p111_p10 = scmp.eq.s32.totalorder %s479_s20, 5 }
  0x1c   : > { %s41_s5 = ssub.s32 %s900_s26, %s40_s4  ;;  %p116_p11 = scmp.ne.s32.totalorder %s776_s10, %s772_s9 }
  0x1d   : > { %p42_p12 = scmp.eq.s32.totalorder %s41_s5, 0  ;;  %p924_p13 = por %p111_p10, %p110_p9 }
  0x1e   : > { %s929_s7 = scalar_select %p98_p8, %s780_s11, %s100_s29  }
  0x1f   : > { %s932_s8 = scalar_select %p42_p12, %s792_s14, %s44_s25  }
  0x20   : > { %1063 = sst [smem:[#allocation17_spill]] %s929_s7  ;;  %p117_p0 = scmp.eq.s32.totalorder %s480_s21, 5 }
  0x21   : > { %1064 = sst [smem:[#allocation18_spill]] %s932_s8  ;;  %p526_p1 = scmp.lt.s32.totalorder %s812_s19, 6 }
  0x22   : > { %s938_s12 = sand.u32 1, %s792_s14   ;;  %p940_p2 = por %p117_p0, %p116_p11 }
  0x23   : > { %s502_s24 = smul.u32 48, %s938_s12  ;;  %s499_s30 = sshll.u32 %s900_s26, 4 }
  0x24   : > { %s1066_s0 = sld [smem:[#allocation19_spill]]  ;;  %p951_p3 = pnand %p526_p1, %p904_p5 }
  0x25   : > { %s141_s5 = scalar_lea.vmem [#allocation3], %s502_s24  ;;  %p487_p4 = scmp.ge.s32.totalorder %s812_s19, 1 }
  0x26   : > { %s151_s23 = sshll.u32 %s141_s5, 4  ;;  %s138_s22 = scalar_lea.sflag [#allocation4], %s938_s12  ;;  %s152_s23 = int_to_ptr.vmem [resolvable:$true] %s151_s23 }
  0x27   : > { %s814_s26 = smov 1536   ;;  %s815_s18 = smov 256  }
  0x28   : > { %s816_s17 = smov 16   ;;  %p183_p6 = scmp.lt.s32.totalorder %s812_s19, 7 }
  0x29   : > { %s172_s4 = scalar_lea.hbm %s1047_s1, %s499_s30  ;;  %s162_s8 = scalar_lea.sflag [#allocation7], %s938_s12 }
  0x2a   : > { %s148_s29 = scalar_lea.hbm %s1066_s0, %s499_s30  ;;  %p184_p5 = pnand %p487_p4, %p183_p6 }
  0x2b   : > { %s149_s21 = sshll.u32 %s148_s29, 4  ;;  %s173_s29 = sshll.u32 %s172_s4, 4  ;;  %s150_s21 = int_to_ptr.hbm [resolvable:$true] %s149_s21  ;;  %s174_s29 = int_to_ptr.hbm [resolvable:$true] %s173_s29 }
  0x2c   : > { %518 = dma.hbm_to_vmem [thread:$0]  (!%p951_p3), %s150_s21, 768, %s152_s23, %s138_s22, %s814_s26, %s815_s18, %s816_s17  }
  0x2d   : > { %s165_s0 = scalar_lea.vmem [#allocation6], %s502_s24  ;;  %187 = sbr.rel (%p184_p5) target bundleno = 313 (0x139), region = 28 }
  0x2e   : > { %s175_s5 = sshll.u32 %s165_s0, 4  ;;  %s189_s14 = sand.u32 (!%p184_p5), 1, %s788_s13   ;;  %s176_s5 = int_to_ptr.vmem [resolvable:$true] %s175_s5 }
  0x2f   : > { %521 = dma.hbm_to_vmem [thread:$0]  (!%p951_p3), %s174_s29, 768, %s176_s5, %s162_s8, %s814_s26, %s815_s18, %s816_s17  }
  0x30   : > { %s504_s7 = smul.u32 (!%p184_p5), 48, %s189_s14  ;;  %s190_s22 = scalar_lea.sflag (!%p184_p5), [#allocation4], %s189_s14 }
  0x32   : > { %s193_s23 = scalar_lea.vmem [#allocation3], %s504_s7 }
  0x33   : > { %759 = dma.done.wait (%p910_p7), %s190_s22, 768  }
  0x34   : > { %761 = vsyncadd (%p910_p7), %s190_s22, 4294966528  ;;  %s200_s30 = scalar_lea.sflag [#allocation7], %s189_s14  ;;  %s971_s24 = scalar_lea.vmem [#allocation6], %s504_s7 }
  0x35   : > { %763 = dma.done.wait (%p910_p7), %s200_s30, 768  }
  0x36   : > { %765 = vsyncadd (%p910_p7), %s200_s30, 4294966528  ;;  %s227_s0 = sand.u32 1, %s776_s10   ;;  %p489_p8 = scmp.ne.s32.totalorder %s796_s15, 0 }
  0x37   : > { %s488_s17 = sshll.u32 %s227_s0, 4 }
  0x38   : > { %s980_s18 = scalar_lea.vmem [#allocation8], %s488_s17  ;;  %239 = sbr.rel (%p489_p8) target bundleno = 66 (0x42), region = 40 }
  0x3d   : > { %v817_v0 = vmov 0.0  }
  0x3e   : > { %240 = vst [vmem:[#allocation2 + $0x10] sm:$0xff] %v817_v0 }
  0x3f   : > { %241 = vst [vmem:[#allocation2] sm:$0xff] %v817_v0 }
  0x40   : > { %242 = vst [vmem:[#allocation2 + $0x18] sm:$0xff] %v817_v0 }
  0x41   : > { %243 = vst [vmem:[#allocation2 + $0x8] sm:$0xff] %v817_v0 }
  0x42 PF: > { %v244_v1 = vld [vmem:[%s193_s23] sm:$0xff]  ;;  %v246_v2 = vld [vmem:[%s193_s23 + $0x10] sm:$0xff]  ;;  %v245_v7 = vld [vmem:[%s193_s23 + $0x8] sm:$0xff]  ;;  %p492_p7 = scmp.ne.s32.totalorder %s796_s15, 2 }
  0x43   : > { %v248_v3 = vld [vmem:[%s193_s23 + $0x20] sm:$0xff]  ;;  %v252_v4 = vmul.f32 %v244_v1, %v244_v1  ;;  %v254_v5 = vmul.f32 %v246_v2, %v246_v2  ;;  %v247_v8 = vld [vmem:[%s193_s23 + $0x18] sm:$0xff]  ;;  %v249_v9 = vld [vmem:[%s193_s23 + $0x28] sm:$0xff]  ;;  %v253_v10 = vmul.f32 %v245_v7, %v245_v7 }
  0x44   : > { %v258_v6 = vmul.f32 %v248_v3, %v248_v3  ;;  %v255_v11 = vmul.f32 %v247_v8, %v247_v8  ;;  %v266_v12 = vld [vmem:[%s971_s24] sm:$0xff]  ;;  %v259_v15 = vmul.f32 %v249_v9, %v249_v9  ;;  %v268_v16 = vld [vmem:[%s971_s24 + $0x10] sm:$0xff]  ;;  %v267_v22 = vld [vmem:[%s971_s24 + $0x8] sm:$0xff] }
  0x45   : > { %v250_v13 = vld [vmem:[#allocation2 + $0x10] sm:$0xff]  ;;  %v256_v14 = vadd.f32 %v254_v5, %v252_v4  ;;  %v272_v18 = vmul.f32 %v266_v12, %v266_v12  ;;  %v274_v20 = vmul.f32 %v268_v16, %v268_v16  ;;  %v269_v23 = vld [vmem:[%s971_s24 + $0x18] sm:$0xff]  ;;  %v271_v24 = vld [vmem:[%s971_s24 + $0x28] sm:$0xff]  ;;  %v273_v27 = vmul.f32 %v267_v22, %v267_v22 }
  0x46   : > { %v270_v17 = vld [vmem:[%s971_s24 + $0x20] sm:$0xff]  ;;  %v257_v19 = vadd.f32 %v255_v11, %v253_v10  ;;  %v275_v28 = vmul.f32 %v269_v23, %v269_v23  ;;  %v279_v29 = vmul.f32 %v271_v24, %v271_v24 }
  0x47   : > { %v278_v21 = vmul.f32 %v270_v17, %v270_v17  ;;  %v260_v25 = vadd.f32 %v258_v6, %v256_v14  ;;  %v251_v26 = vld [vmem:[#allocation2] sm:$0xff]  ;;  %v276_v31 = vadd.f32 %v274_v20, %v272_v18  ;;  %v311_v60 = vld [vmem:[#allocation2 + $0x18] sm:$0xff] }
  0x48   : > { %v261_v30 = vadd.f32 %v259_v15, %v257_v19  ;;  %v277_v33 = vadd.f32 %v275_v28, %v273_v27  ;;  %v312_v63 = vld [vmem:[#allocation2 + $0x8] sm:$0xff] }
  0x49   : > { %v262_v32 = vadd.f32 %v260_v25, %v250_v13  ;;  %v280_v35 = vadd.f32 %v278_v21, %v276_v31 }
  0x4a   : > { %v263_v34 = vadd.f32 %v261_v30, %v251_v26  ;;  %v281_v36 = vadd.f32 %v279_v29, %v277_v33 }
  0x4b   : > { %264 = vst [vmem:[#allocation2 + $0x10] sm:$0xff] %v262_v32  ;;  %622 = vrsqrt.f32 %v280_v35  ;;  %vm289_vm0 = vcmp.eq.f32.partialorder %v280_v35, inf  ;;  %v292_v48 = vand.u32 2147483648, %v280_v35  ;;  %vm291_vm1 = vcmp.eq.f32.partialorder %v280_v35, 0.0 }
  0x4c   : > { %265 = vst [vmem:[#allocation2] sm:$0xff] %v263_v34  ;;  %624 = vrsqrt.f32 %v281_v36  ;;  %vm301_vm2 = vcmp.eq.f32.partialorder %v281_v36, inf  ;;  %v304_v51 = vand.u32 2147483648, %v281_v36  ;;  %vm303_vm3 = vcmp.eq.f32.partialorder %v281_v36, 0.0 }
  0x51   : > { %v623_v37 = vpop.eup %622 }
  0x52   : > { %v625_v38 = vpop.eup %624  ;;  %v283_v39 = vmul.f32 %v623_v37, %v280_v35 }
  0x53   : > { %v295_v40 = vmul.f32 %v625_v38, %v281_v36 }
  0x54   : > { %v284_v41 = vmul.f32 %v623_v37, %v283_v39 }
  0x55   : > { %v296_v42 = vmul.f32 %v625_v38, %v295_v40 }
  0x56   : > { %v285_v43 = vmul.f32 0.5, %v284_v41 }
  0x57   : > { %v297_v44 = vmul.f32 0.5, %v296_v42 }
  0x58   : > { %v286_v45 = vsub.f32 1.5, %v285_v43 }
  0x59   : > { %v298_v46 = vsub.f32 1.5, %v297_v44 }
  0x5a   : > { %v287_v47 = vmul.f32 %v623_v37, %v286_v45 }
  0x5b   : > { %v299_v49 = vmul.f32 %v625_v38, %v298_v46 }
  0x5c   : > { %v288_v50 = vmul.f32 %v287_v47, %v280_v35 }
  0x5d   : > { %v300_v52 = vmul.f32 %v299_v49, %v281_v36 }
  0x5e   : > { %v290_v53 = vsel %vm289_vm0, %v280_v35, %v288_v50 }
  0x5f   : > { %v293_v54 = vsel %vm291_vm1, %v292_v48, %v290_v53  ;;  %v302_v55 = vsel %vm301_vm2, %v281_v36, %v300_v52 }
  0x60   : > { %v490_v56 = vadd.f32 -1.0, %v293_v54  ;;  %v305_v57 = vsel %vm303_vm3, %v304_v51, %v302_v55 }
  0x61   : > { %v491_v58 = vadd.f32 -1.0, %v305_v57 }
  0x62   : > { %v308_v59 = vmax.f32 %v490_v56, 0.0 }
  0x63   : > { %v309_v61 = vmax.f32 %v491_v58, 0.0 }
  0x64   : > { %v313_v62 = vmul.f32 %v308_v59, %v308_v59 }
  0x65   : > { %v314_v0 = vmul.f32 %v309_v61, %v309_v61  ;;  %322 = sbr.rel (%p492_p7) target bundleno = 297 (0x129), region = 44 }
  0x66   : > { %v315_v1 = vadd.f32 %v313_v62, %v311_v60 }
  0x67   : > { %v316_v2 = vadd.f32 %v314_v0, %v312_v63 }
  0x68   : > { %317 = vst [vmem:[#allocation2 + $0x18] sm:$0xff] %v315_v1 }
  0x69   : > { %318 = vst [vmem:[#allocation2 + $0x8] sm:$0xff] %v316_v2 }
  0x6a   : > { %v323_v3 = vld [vmem:[#allocation2 + $0x10] sm:$0xff]  ;;  %v324_v4 = vld [vmem:[#allocation2] sm:$0xff] }
  0x6b   : > { %v325_v5 = vadd.f32 %v324_v4, %v323_v3 }
  0x6d   : > { %326 = vadd.xlane.f32.xlu0 %v325_v5 }
  0x6f   : > { %v337_v6 = vld [vmem:[#allocation2 + $0x18] sm:$0xff] }
  0x70   : > { %v338_v7 = vld [vmem:[#allocation2 + $0x8] sm:$0xff] }
  0x71   : > { %v339_v8 = vadd.f32 %v338_v7, %v337_v6 }
  0x75   : > { %340 = vadd.xlane.f32.xlu0 %v339_v8 }
  0xe0   : > { %v327_v9 = vpop.xlane.xlu0 %326 }
  0xe1   : > { %v328_v10 = vrot.slane %v327_v9, 4 }
  0xe3   : > { %v329_v11 = vadd.f32 %v328_v10, %v327_v9 }
  0xe5   : > { %v330_v12 = vrot.slane %v329_v11, 2 }
  0xe7   : > { %v331_v13 = vadd.f32 %v330_v12, %v329_v11 }
  0xe8   : > { %v341_v14 = vpop.xlane.xlu0 %340 }
  0xe9   : > { %v342_v15 = vrot.slane %v341_v14, 4  ;;  %v332_v16 = vrot.slane %v331_v13, 1 }
  0xeb   : > { %v343_v17 = vadd.f32 %v342_v15, %v341_v14  ;;  %v333_v18 = vadd.f32 %v332_v16, %v331_v13 }
  0xed   : > { %v344_v19 = vrot.slane %v343_v17, 2  ;;  %505 = vpush %v333_v18 }
  0xef   : > { %v345_v20 = vadd.f32 %v344_v19, %v343_v17 }
  0xf1   : > { %v346_v21 = vrot.slane %v345_v20, 1 }
  0xf3   : > { %v347_v22 = vadd.f32 %v346_v21, %v345_v20 }
  0xf5   : > { %507 = vpush %v347_v22 }
 0x11e   : > { %s506_s14 = spop %505 }
 0x11f   : > { %v335_v23 = vstv %s506_s14 }
 0x120   : > { %336 = vst [vmem:[%s980_s18] sm:$0xff] %v335_v23 }
 0x126   : > { %s508_s15 = spop %507 }
 0x127   : > { %v349_v24 = vstv %s508_s15 }
 0x128   : > { %493 = vst [vmem:[%s980_s18 + $0x8] sm:$0xff] %v349_v24 }
 0x129 PF: > { %s501_s28 = sshll.u32 %s800_s16, 4  ;;  %s365_s25 = sshll.u32 %s980_s18, 4  ;;  %s366_s25 = int_to_ptr.vmem [resolvable:$true] %s365_s25 }
 0x12a   : > { %s364_s12 = scalar_lea.hbm %s1048_s2, %s501_s28  ;;  %s353_s26 = scalar_lea.sflag [#allocation5], %s227_s0 }
 0x12b   : > { %s367_s21 = sshll.u32 %s364_s12, 4  ;;  %s706_s16 = scalar_lea.hbm %s1048_s2, 32  ;;  %s368_s21 = int_to_ptr.hbm [resolvable:$true] %s367_s21 }
 0x12c   : > { %s700_s27 = sshra.s32 %s368_s21, 4  ;;  %s701_s27 = int_to_ptr.hbm [resolvable:$true] %s700_s27 }
 0x12d   : > { %s702_s3 = scalar_lea.hbm %s701_s27, 16  ;;  %p707_p12 = scmp.lt.s32.totalorder %s701_s27, %s1048_s2 }
 0x12e   : > { %p703_p9 = scmp.ne.s32.totalorder %s701_s27, %s702_s3  ;;  %p708_p0 = scmp.lt.s32.totalorder %s706_s16, %s702_s3 }
 0x130   : > { %p704_p10 = pnand %p703_p9, %p924_p13  ;;  %p709_p1 = por %p708_p0, %p707_p12 }
 0x132   : > { %p705_p11 = pneg %p704_p10 }
 0x134   : > { %p710_p3 = pnand %p709_p1, %p705_p11 }
 0x136   : > { %713 = shalt.err (!%p710_p3)
}
 0x137   : > { %s818_s23 = smov 128   ;;  %s819_s30 = smov 8  }
 0x138   : > { %513 = dma.vmem_to_hbm [thread:$0]  (%p924_p13), %s366_s25, 256, %s368_s21, %s353_s26, %s818_s23, %s818_s23, %s819_s30  }
 0x139 PF: > { %p527_p4 = scmp.ge.s32.totalorder %s812_s19, 2  ;;  %s382_s24 = sand.u32 1, %s772_s9  }
 0x13a   : > { %s383_s0 = scalar_lea.sflag [#allocation5], %s382_s24 }
 0x13b   : > { %p523_p6 = pnand %p527_p4, %p940_p2 }
 0x13d   : > { %p524_p5 = pneg %p523_p6 }
 0x13f   : > { %767 = dma.done.wait (%p524_p5), %s383_s0, 256  }
 0x140   : > { %769 = vsyncadd (%p524_p5), %s383_s0, 4294967040  ;;  %s21_s19 = sadd.s32 1, %s812_s19   ;;  %s1068_s17 = sld [smem:[#allocation17_spill]] }
 0x141   : > { %p18_p8 = scmp.ge.s32.totalorder %s21_s19, 8   ;;  %s1069_s6 = sld [smem:[#allocation12_spill]] }
 0x142   : > { %s1070_s14 = sld [smem:[#allocation18_spill]]  ;;  %s1075_s9 = smov %s776_s10 }
 0x143   : > { %s1071_s15 = sld [smem:[#allocation13_spill]]  ;;  %s1076_s10 = smov %s780_s11 }
 0x144   : > { %s1072_s16 = sld [smem:[#allocation14_spill]]  ;;  %s1078_s12 = smov %s788_s13 }
 0x145   : > { %s1073_s18 = sld [smem:[#allocation15_spill]] }
 0x146   : > { %s1074_s28 = sld [smem:[#allocation16_spill]]  ;;  %s1077_s11 = smov %s1068_s17 }
 0x147   : > { %s1079_s13 = smov %s1069_s6 }
 0x148   :  { %20 = sbr.rel (!%p18_p8) target bundleno = 13 (0xd), region = 96 }
 0x14b   : > { %s1080_s17 = smov %s1073_s18 }
 0x14c   : > { %s1081_s18 = smov %s1074_s28 }
 0x14d   :  { %389 = vsyncpa [#allocation4], 1 }
 0x14e   :  { %391 = vsyncpa [#allocation4 + $0x1], 1 }
 0x14f   :  { %392 = vsyncpa [#allocation7], 1 }
 0x150   :  { %394 = vsyncpa [#allocation7 + $0x1], 1 }
 0x151   :  { %395 = vsyncpa [#allocation5], 1 }
 0x152   :  { %397 = vsyncpa [#allocation5 + $0x1], 1 }

</bundles_post_ra>
